<compile_context>
chip_gen: v7x
topology: tpu7x:2x2x1
jax: 0.10.0
libtpu: 0.0.40
codegen_flags: <defaults>
</compile_context>

<pallas_src>
import jax
import jax.numpy as jnp
from jax.experimental import pallas as pl
from jax.experimental.pallas import tpu as pltpu

_MIB = 1024 * 1024
_BUFFERED_SUPPORTED = None  # lazily probed: does this JAX honor pipeline_mode=pl.Buffered(1)?


def _round_up(n, m):
    return ((n + m - 1) // m) * m


def _vmem_capacity_bytes():
    """Best-effort per-core VMEM capacity; conservative 64 MiB (v7x) fallback."""
    try:
        return int(pltpu.get_tpu_info().vmem_capacity_bytes)
    except Exception:
        return 64 * _MIB


def _maybe_buffered_spec(shape, index_map, buffers, enable):
    """BlockSpec, optionally with pipeline_mode=pl.Buffered(buffers)."""
    buffered = getattr(pl, "Buffered", None)
    if enable and buffers is not None and buffered is not None:
        try:
            return pl.BlockSpec(shape, index_map, pipeline_mode=buffered(buffers))
        except TypeError:  # older BlockSpec signature without pipeline_mode
            pass
    return pl.BlockSpec(shape, index_map)


def _vmem_footprint_bytes(tm, Cp, th, out_bytes, use_acc, single_buffer_x):
    """Rough per-grid-step VMEM working set for the tiling used below."""
    x_bufs = 1 if single_buffer_x else 2
    return (x_bufs * tm * Cp * 2              # x tile (bf16)
            + 2 * Cp * th * 2                 # W1 tile (bf16, double-buffered)
            + 2 * th * Cp * 2                 # W2 tile (bf16, double-buffered)
            + th * 4 + Cp * 4                 # biases (single-buffered)
            + 2 * tm * Cp * out_bytes         # output tile (double-buffered)
            + (tm * Cp * 4 if use_acc else 0)  # f32 accumulator scratch
            + tm * th * (4 + 2))              # h intermediate (f32 + bf16 copy)


# ---------------------------------------------------------------------------
# Kernels
# ---------------------------------------------------------------------------
def ffn_kernel_accum_out(x_ref, w1_ref, b1_ref, w2_ref, b2_ref, o_ref):
    """f32 output: accumulate the H-reduction directly in the resident output block."""
    k = pl.program_id(1)

    @pl.when(k == 0)
    def _():
        o_ref[...] = jnp.zeros_like(o_ref)

    # Linear 1: bf16 operands on the MXU, f32 accumulate; bias + ReLU in f32.
    h = jnp.dot(x_ref[...], w1_ref[...], preferred_element_type=jnp.float32)
    h = jnp.maximum(h + b1_ref[...], 0.0)

    # Linear 2: this hidden-tile's contribution, accumulated in f32 in o_ref.
    o_ref[...] += jnp.dot(h.astype(w2_ref.dtype), w2_ref[...],
                          preferred_element_type=jnp.float32)

    @pl.when(k == pl.num_programs(1) - 1)
    def _():
        # Dropout(p=0.0) is the identity.
        o_ref[...] += b2_ref[...]


def ffn_kernel_acc_scratch(x_ref, w1_ref, b1_ref, w2_ref, b2_ref, o_ref, acc_ref):
    """Non-f32 output: f32 VMEM accumulator, cast to o_ref.dtype on the last step."""
    k = pl.program_id(1)

    @pl.when(k == 0)
    def _():
        acc_ref[...] = jnp.zeros_like(acc_ref)

    h = jnp.dot(x_ref[...], w1_ref[...], preferred_element_type=jnp.float32)
    h = jnp.maximum(h + b1_ref[...], 0.0)
    acc_ref[...] += jnp.dot(h.astype(w2_ref.dtype), w2_ref[...],
                            preferred_element_type=jnp.float32)

    @pl.when(k == pl.num_programs(1) - 1)
    def _():
        o_ref[...] = (acc_ref[...] + b2_ref[...]).astype(o_ref.dtype)


# ---------------------------------------------------------------------------
# Host-side preparation (hoisted out of the per-call path)
# ---------------------------------------------------------------------------
def prepare_weights(w1, b1, w2, b2, *, th=512):
    """Pad/cast FFN parameters once.  w1:(C,H), b1:(H,), w2:(H,C), b2:(C,).

    bf16 MXU weights, f32 biases, lane-padded to Cp=round_up(C,128) and
    Hp=round_up(H,th_eff).  Zero padding is exact: padded W1 cols / b1 entries
    give ReLU(0)=0 and padded W2 rows contribute 0.
    """
    C, H = w1.shape
    assert w2.shape == (H, C) and b1.shape == (H,) and b2.shape == (C,)
    Cp = _round_up(C, 128)
    th_eff = min(th, _round_up(H, 128))   # keep >=256 for v6e/v7x MXU whenever H allows
    Hp = _round_up(H, th_eff)

    def _cast(a, dt):
        return a if a.dtype == dt else a.astype(dt)

    def _pad2(a, rows, cols):
        pr, pc = rows - a.shape[0], cols - a.shape[1]
        return a if (pr == 0 and pc == 0) else jnp.pad(a, ((0, pr), (0, pc)))

    return dict(
        w1p=_pad2(_cast(w1, jnp.bfloat16), Cp, Hp),
        b1p=_pad2(_cast(b1, jnp.float32).reshape(1, H), 1, Hp),
        w2p=_pad2(_cast(w2, jnp.bfloat16), Hp, Cp),
        b2p=_pad2(_cast(b2, jnp.float32).reshape(1, C), 1, Cp),
        C=C, H=H, Cp=Cp, Hp=Hp, th_eff=th_eff,
    )


def _ffn_pallas(x, prep, *, tm=None, out_dtype=None):
    global _BUFFERED_SUPPORTED
    C, Cp, Hp, th_eff = prep["C"], prep["Cp"], prep["Hp"], prep["th_eff"]
    lead = x.shape[:-1]
    assert x.shape[-1] == C, "channel dim mismatch"
    M = 1
    for d in lead:
        M *= int(d)

    out_dtype = x.dtype if out_dtype is None else jnp.dtype(out_dtype)
    out_bytes = jnp.dtype(out_dtype).itemsize
    use_acc = out_dtype != jnp.dtype(jnp.float32)

    # Generation-aware VMEM budget & default row tile (v5e/v6e: 128 MiB, v7x: 64 MiB/TC).
    vmem_cap = _vmem_capacity_bytes()
    if vmem_cap >= 120 * _MIB:
        vmem_limit = 104 * _MIB
        tm_default = 1024
        vmem_tight = False
    else:
        vmem_limit = min(56 * _MIB, vmem_cap * 7 // 8)
        tm_default = 512
        vmem_tight = True

    tm = tm_default if tm is None else int(tm)
    # Shrink tm until the estimated per-step working set fits ~90% of the scoped limit.
    while tm > 128 and _vmem_footprint_bytes(tm, Cp, th_eff, out_bytes, use_acc,
                                             vmem_tight) > vmem_limit * 9 // 10:
        tm //= 2

    tm_eff = min(tm, _round_up(M, 8))
    # Megacore guard: keep >= 2 M-tiles (so the "parallel" axis splits across both
    # TensorCores) whenever that still allows tm >= 256.
    if M >= 512:
        tm_eff = min(tm_eff, max(256, ((M // 2) // 256) * 256))
    Mp = _round_up(M, tm_eff)

    # x pre-pass: skip cast/pad when already bf16 / aligned.
    x2d = x.reshape(M, C)
    if x2d.dtype != jnp.bfloat16:
        x2d = x2d.astype(jnp.bfloat16)
    if (Mp, Cp) != (M, C):
        x2d = jnp.pad(x2d, ((0, Mp - M), (0, Cp - C)))

    grid = (Mp // tm_eff, Hp // th_eff)   # reduction (H) axis innermost
    n_m_tiles = grid[0]

    kernel = ffn_kernel_acc_scratch if use_acc else ffn_kernel_accum_out
    scratch = [pltpu.VMEM((tm_eff, Cp), jnp.float32)] if use_acc else []

    cost = pl.CostEstimate(
        flops=4 * Mp * Cp * Hp,
        transcendentals=0,
        bytes_accessed=(2 * (Cp * Hp + Hp * Cp) * n_m_tiles   # weights, re-streamed per M tile
                        + Mp * Cp * 2                          # x (bf16)
                        + Mp * Cp * out_bytes                  # output
                        + 4 * (Hp + Cp)),                      # biases
    )

    def _call(use_buffered):
        in_specs = [
            _maybe_buffered_spec((tm_eff, Cp), lambda i, k: (i, 0),
                                 1 if vmem_tight else None, use_buffered),         # x
            pl.BlockSpec((Cp, th_eff), lambda i, k: (0, k)),                       # W1
            _maybe_buffered_spec((1, th_eff), lambda i, k: (0, k), 1, use_buffered),  # b1
            pl.BlockSpec((th_eff, Cp), lambda i, k: (k, 0)),                       # W2
            _maybe_buffered_spec((1, Cp), lambda i, k: (0, 0), 1, use_buffered),   # b2
        ]
        return pl.pallas_call(
            kernel,
            out_shape=jax.ShapeDtypeStruct((Mp, Cp), out_dtype),
            grid_spec=pltpu.PrefetchScalarGridSpec(
                num_scalar_prefetch=0,
                grid=grid,
                in_specs=in_specs,
                out_specs=pl.BlockSpec((tm_eff, Cp), lambda i, k: (i, 0)),
                scratch_shapes=scratch,
            ),
            compiler_params=pltpu.CompilerParams(
                dimension_semantics=("parallel", "arbitrary"),
                vmem_limit_bytes=int(vmem_limit),
            ),
            cost_estimate=cost,
        )(x2d, prep["w1p"], prep["b1p"], prep["w2p"], prep["b2p"])

    if _BUFFERED_SUPPORTED is None:
        try:
            out2d = _call(True)
            _BUFFERED_SUPPORTED = True
        except Exception:
            _BUFFERED_SUPPORTED = False
            out2d = _call(False)
    else:
        out2d = _call(_BUFFERED_SUPPORTED)

    if (Mp, Cp) != (M, C):
        out2d = out2d[:M, :C]
    return out2d.reshape(lead + (C,))


# ---------------------------------------------------------------------------
# Public API
# ---------------------------------------------------------------------------
def feed_forward(x, w1, b1, w2, b2, *, tm=None, th=512, out_dtype=None):
    """Position-wise MLP: Dropout(ReLU(x @ w1 + b1) @ w2 + b2), p = 0.0 (identity).

    Convenience entry point (pads/casts the weights on every call).  For repeated
    use, hoist that cost with make_feed_forward() / prepare_weights().
    """
    return _ffn_pallas(x, prepare_weights(w1, b1, w2, b2, th=th),
                       tm=tm, out_dtype=out_dtype)


def make_feed_forward(w1, b1, w2, b2, *, tm=None, th=512, out_dtype=None):
    """Return an x -> FFN(x) closure with the weight pad/cast done once (hoisted)."""
    prep = prepare_weights(w1, b1, w2, b2, th=th)

    def apply(x):
        return _ffn_pallas(x, prep, tm=tm, out_dtype=out_dtype)

    return apply


def _ref_ffn_bf16(x, w1, b1, w2, b2):
    """Reference with the same bf16-operand / f32-accumulate arithmetic."""
    xb = x.reshape(-1, x.shape[-1]).astype(jnp.bfloat16)
    h = jnp.dot(xb, w1.astype(jnp.bfloat16),
                preferred_element_type=jnp.float32) + b1.astype(jnp.float32)
    h = jnp.maximum(h, 0.0)
    o = jnp.dot(h.astype(jnp.bfloat16), w2.astype(jnp.bfloat16),
                preferred_element_type=jnp.float32) + b2.astype(jnp.float32)
    return o.reshape(x.shape[:-1] + (w2.shape[1],))


if __name__ == "__main__":
    n_embd = 64
    hidden = 4 * n_embd
    B, T = 2, 8

    key = jax.random.PRNGKey(0)
    kx, kw1, kb1, kw2, kb2 = jax.random.split(key, 5)

    # Deterministic synthetic parameters (shapes from nn.Linear in __init__),
    # stored as (in, out), i.e. transpose of nn.Linear's (out, in) weight.
    x = jax.random.normal(kx, (B, T, n_embd), dtype=jnp.float32)
    w1 = jax.random.normal(kw1, (n_embd, hidden), dtype=jnp.float32) * 0.02
    b1 = jax.random.normal(kb1, (hidden,), dtype=jnp.float32) * 0.02
    w2 = jax.random.normal(kw2, (hidden, n_embd), dtype=jnp.float32) * 0.02
    b2 = jax.random.normal(kb2, (n_embd,), dtype=jnp.float32) * 0.02

    # Weight pad/cast hoisted out of the call path.
    ffn = make_feed_forward(w1, b1, w2, b2)

    out = jax.block_until_ready(ffn(x))
    assert out.shape == (B, T, n_embd) and out.dtype == x.dtype

    ref_bf16 = _ref_ffn_bf16(x, w1, b1, w2, b2)
    ref_f32 = jnp.maximum(x @ w1 + b1, 0.0) @ w2 + b2
    assert jnp.allclose(out, ref_bf16, atol=2e-3, rtol=2e-3), "mismatch vs bf16 reference"
    assert jnp.allclose(out, ref_f32, atol=5e-2, rtol=5e-2), "mismatch vs f32 reference"

    # Exercise multiple M tiles, the H-reduction accumulator path, and the megacore guard.
    x2 = jax.random.normal(jax.random.PRNGKey(1), (4, 128, n_embd), dtype=jnp.float32)
    out2 = jax.block_until_ready(feed_forward(x2, w1, b1, w2, b2, th=128))
    ref2 = _ref_ffn_bf16(x2, w1, b1, w2, b2)
    assert jnp.allclose(out2, ref2, atol=2e-3, rtol=2e-3), "mismatch (tiled) vs bf16 reference"

    # bf16-output path (halved writeback / output VMEM) uses the f32 acc-scratch kernel.
    ffn_bf16_out = make_feed_forward(w1, b1, w2, b2, out_dtype=jnp.bfloat16)
    out3 = jax.block_until_ready(ffn_bf16_out(x))
    assert out3.dtype == jnp.bfloat16
    assert jnp.allclose(out3.astype(jnp.float32), ref_bf16, atol=2e-2, rtol=2e-2), \
        "mismatch (bf16 output) vs bf16 reference"

    print("KERNEL_OK")
</pallas_src>

<mosaic_0001>
module attributes {stable_mosaic.version = 11 : i64} {
  func.func @ffn_kernel_accum_out(%arg0: i32, %arg1: i32, %arg2: memref<16x128xbf16, #tpu.memory_space<vmem>>, %arg3: memref<128x256xbf16, #tpu.memory_space<vmem>>, %arg4: memref<1x256xf32, #tpu.memory_space<vmem>>, %arg5: memref<256x128xbf16, #tpu.memory_space<vmem>>, %arg6: memref<1x128xf32, #tpu.memory_space<vmem>>, %arg7: memref<16x128xf32, #tpu.memory_space<vmem>>) attributes {dimension_semantics = [#tpu.dimension_semantics<parallel>, #tpu.dimension_semantics<arbitrary>], iteration_bounds = array<i64: 1, 1>, scalar_prefetch = 0 : i64, scratch_operands = 0 : i64, tpu.core_type = #tpu.core_type<tc>, window_params = [{pipeline_mode = #tpu.pipeline_mode<synchronous>, transform_indices = @transform_0, window_bounds = array<i64: 16, 128>}, {transform_indices = @transform_1, window_bounds = array<i64: 128, 256>}, {pipeline_mode = #tpu.pipeline_mode<synchronous>, transform_indices = @transform_2, window_bounds = array<i64: 1, 256>}, {transform_indices = @transform_3, window_bounds = array<i64: 256, 128>}, {pipeline_mode = #tpu.pipeline_mode<synchronous>, transform_indices = @transform_4, window_bounds = array<i64: 1, 128>}, {transform_indices = @transform_5, window_bounds = array<i64: 16, 128>}]} {
    %c0_i32 = arith.constant 0 : i32
    %0 = arith.cmpi eq, %arg1, %c0_i32 : i32
    %1 = arith.extui %0 : i1 to i32
    %c0_i32_0 = arith.constant 0 : i32
    %2 = arith.cmpi ne, %1, %c0_i32_0 : i32
    scf.if %2 {
      %cst_16 = arith.constant 0.000000e+00 : f32
      %20 = vector.broadcast %cst_16 : f32 to vector<16x128xf32>
      %c0_17 = arith.constant 0 : index
      %c0_18 = arith.constant 0 : index
      %21 = vector.load %arg7[%c0_17, %c0_18] : memref<16x128xf32, #tpu.memory_space<vmem>>, vector<16x128xf32>
      tpu.vector_store %arg7[%c0_17, %c0_18], %20 {strides = array<i32>} : memref<16x128xf32, #tpu.memory_space<vmem>>, vector<16x128xf32>,
    } else {
    }
    %c0 = arith.constant 0 : index
    %c0_1 = arith.constant 0 : index
    %3 = vector.load %arg2[%c0, %c0_1] : memref<16x128xbf16, #tpu.memory_space<vmem>>, vector<16x128xbf16>
    %c0_2 = arith.constant 0 : index
    %c0_3 = arith.constant 0 : index
    %4 = vector.load %arg3[%c0_2, %c0_3] : memref<128x256xbf16, #tpu.memory_space<vmem>>, vector<128x256xbf16>
    %cst = arith.constant dense<0.000000e+00> : vector<16x256xf32>
    %5 = tpu.matmul %3, %4, %cst {dimension_numbers = #tpu.dot_dimension_numbers<[1], [0], [0], [1], [0, 0, 1, 1], [], []>} : vector<16x128xbf16>, vector<128x256xbf16>, vector<16x256xf32> -> vector<16x256xf32>
    %c0_4 = arith.constant 0 : index
    %c0_5 = arith.constant 0 : index
    %6 = vector.load %arg4[%c0_4, %c0_5] : memref<1x256xf32, #tpu.memory_space<vmem>>, vector<1x256xf32>
    %7 = vector.broadcast %6 : vector<1x256xf32> to vector<16x256xf32>
    %8 = arith.addf %5, %7 : vector<16x256xf32>
    %cst_6 = arith.constant 0.000000e+00 : f32
    %9 = vector.broadcast %cst_6 : f32 to vector<16x256xf32>
    %10 = arith.maximumf %8, %9 : vector<16x256xf32>
    %c0_7 = arith.constant 0 : index
    %c0_8 = arith.constant 0 : index
    %11 = vector.load %arg7[%c0_7, %c0_8] : memref<16x128xf32, #tpu.memory_space<vmem>>, vector<16x128xf32>
    %12 = arith.truncf %10 : vector<16x256xf32> to vector<16x256xbf16>
    %c0_9 = arith.constant 0 : index
    %c0_10 = arith.constant 0 : index
    %13 = vector.load %arg5[%c0_9, %c0_10] : memref<256x128xbf16, #tpu.memory_space<vmem>>, vector<256x128xbf16>
    %cst_11 = arith.constant dense<0.000000e+00> : vector<16x128xf32>
    %14 = tpu.matmul %12, %13, %cst_11 {dimension_numbers = #tpu.dot_dimension_numbers<[1], [0], [0], [1], [0, 0, 1, 1], [], []>} : vector<16x256xbf16>, vector<256x128xbf16>, vector<16x128xf32> -> vector<16x128xf32>
    %15 = arith.addf %11, %14 : vector<16x128xf32>
    %c0_12 = arith.constant 0 : index
    %c0_13 = arith.constant 0 : index
    %16 = vector.load %arg7[%c0_12, %c0_13] : memref<16x128xf32, #tpu.memory_space<vmem>>, vector<16x128xf32>
    tpu.vector_store %arg7[%c0_12, %c0_13], %15 {strides = array<i32>} : memref<16x128xf32, #tpu.memory_space<vmem>>, vector<16x128xf32>,
    %c0_i32_14 = arith.constant 0 : i32
    %17 = arith.cmpi eq, %arg1, %c0_i32_14 : i32
    %18 = arith.extui %17 : i1 to i32
    %c0_i32_15 = arith.constant 0 : i32
    %19 = arith.cmpi ne, %18, %c0_i32_15 : i32
    scf.if %19 {
      %c0_16 = arith.constant 0 : index
      %c0_17 = arith.constant 0 : index
      %20 = vector.load %arg7[%c0_16, %c0_17] : memref<16x128xf32, #tpu.memory_space<vmem>>, vector<16x128xf32>
      %c0_18 = arith.constant 0 : index
      %c0_19 = arith.constant 0 : index
      %21 = vector.load %arg6[%c0_18, %c0_19] : memref<1x128xf32, #tpu.memory_space<vmem>>, vector<1x128xf32>
      %22 = vector.broadcast %21 : vector<1x128xf32> to vector<16x128xf32>
      %23 = arith.addf %20, %22 : vector<16x128xf32>
      %c0_20 = arith.constant 0 : index
      %c0_21 = arith.constant 0 : index
      %24 = vector.load %arg7[%c0_20, %c0_21] : memref<16x128xf32, #tpu.memory_space<vmem>>, vector<16x128xf32>
      tpu.vector_store %arg7[%c0_20, %c0_21], %23 {strides = array<i32>} : memref<16x128xf32, #tpu.memory_space<vmem>>, vector<16x128xf32>,
    } else {
    }
    return
  }
  func.func @transform_0(%arg0: i32, %arg1: i32) -> (i32, i32) {
    %c0_i32 = arith.constant 0 : i32
    %c0_i32_0 = arith.constant 0 : i32
    return %arg0, %c0_i32 : i32, i32
  }
  func.func @transform_1(%arg0: i32, %arg1: i32) -> (i32, i32) {
    %c0_i32 = arith.constant 0 : i32
    %c0_i32_0 = arith.constant 0 : i32
    return %c0_i32, %arg1 : i32, i32
  }
  func.func @transform_2(%arg0: i32, %arg1: i32) -> (i32, i32) {
    %c0_i32 = arith.constant 0 : i32
    %c0_i32_0 = arith.constant 0 : i32
    return %c0_i32, %arg1 : i32, i32
  }
  func.func @transform_3(%arg0: i32, %arg1: i32) -> (i32, i32) {
    %c0_i32 = arith.constant 0 : i32
    %c0_i32_0 = arith.constant 0 : i32
    return %arg1, %c0_i32 : i32, i32
  }
  func.func @transform_4(%arg0: i32, %arg1: i32) -> (i32, i32) {
    %c0_i32 = arith.constant 0 : i32
    %c0_i32_0 = arith.constant 0 : i32
    %c0_i32_1 = arith.constant 0 : i32
    return %c0_i32, %c0_i32_0 : i32, i32
  }
  func.func @transform_5(%arg0: i32, %arg1: i32) -> (i32, i32) {
    %c0_i32 = arith.constant 0 : i32
    %c0_i32_0 = arith.constant 0 : i32
    return %arg0, %c0_i32 : i32, i32
  }
}

module attributes {stable_mosaic.version = 11 : i64} {
  func.func @ffn_kernel_accum_out(%arg0: i32, %arg1: i32, %arg2: memref<16x128xbf16, #tpu.memory_space<vmem>>, %arg3: memref<128x256xbf16, #tpu.memory_space<vmem>>, %arg4: memref<1x256xf32, #tpu.memory_space<vmem>>, %arg5: memref<256x128xbf16, #tpu.memory_space<vmem>>, %arg6: memref<1x128xf32, #tpu.memory_space<vmem>>, %arg7: memref<16x128xf32, #tpu.memory_space<vmem>>) attributes {dimension_semantics = [#tpu.dimension_semantics<parallel>, #tpu.dimension_semantics<arbitrary>], iteration_bounds = array<i64: 1, 1>, scalar_prefetch = 0 : i64, scratch_operands = 0 : i64, tpu.core_type = #tpu.core_type<tc>, window_params = [{transform_indices = @transform_0, window_bounds = array<i64: 16, 128>}, {transform_indices = @transform_1, window_bounds = array<i64: 128, 256>}, {transform_indices = @transform_2, window_bounds = array<i64: 1, 256>}, {transform_indices = @transform_3, window_bounds = array<i64: 256, 128>}, {pipeline_mode = #tpu.pipeline_mode<synchronous>, transform_indices = @transform_4, window_bounds = array<i64: 1, 128>}, {transform_indices = @transform_5, window_bounds = array<i64: 16, 128>}]} {
    %c0_i32 = arith.constant 0 : i32
    %0 = arith.cmpi eq, %arg1, %c0_i32 : i32
    %1 = arith.extui %0 : i1 to i32
    %c0_i32_0 = arith.constant 0 : i32
    %2 = arith.cmpi ne, %1, %c0_i32_0 : i32
    scf.if %2 {
      %cst_16 = arith.constant 0.000000e+00 : f32
      %20 = vector.broadcast %cst_16 : f32 to vector<16x128xf32>
      %c0_17 = arith.constant 0 : index
      %c0_18 = arith.constant 0 : index
      %21 = vector.load %arg7[%c0_17, %c0_18] : memref<16x128xf32, #tpu.memory_space<vmem>>, vector<16x128xf32>
      tpu.vector_store %arg7[%c0_17, %c0_18], %20 {strides = array<i32>} : memref<16x128xf32, #tpu.memory_space<vmem>>, vector<16x128xf32>,
    } else {
    }
    %c0 = arith.constant 0 : index
    %c0_1 = arith.constant 0 : index
    %3 = vector.load %arg2[%c0, %c0_1] : memref<16x128xbf16, #tpu.memory_space<vmem>>, vector<16x128xbf16>
    %c0_2 = arith.constant 0 : index
    %c0_3 = arith.constant 0 : index
    %4 = vector.load %arg3[%c0_2, %c0_3] : memref<128x256xbf16, #tpu.memory_space<vmem>>, vector<128x256xbf16>
    %cst = arith.constant dense<0.000000e+00> : vector<16x256xf32>
    %5 = tpu.matmul %3, %4, %cst {dimension_numbers = #tpu.dot_dimension_numbers<[1], [0], [0], [1], [0, 0, 1, 1], [], []>} : vector<16x128xbf16>, vector<128x256xbf16>, vector<16x256xf32> -> vector<16x256xf32>
    %c0_4 = arith.constant 0 : index
    %c0_5 = arith.constant 0 : index
    %6 = vector.load %arg4[%c0_4, %c0_5] : memref<1x256xf32, #tpu.memory_space<vmem>>, vector<1x256xf32>
    %7 = vector.broadcast %6 : vector<1x256xf32> to vector<16x256xf32>
    %8 = arith.addf %5, %7 : vector<16x256xf32>
    %cst_6 = arith.constant 0.000000e+00 : f32
    %9 = vector.broadcast %cst_6 : f32 to vector<16x256xf32>
    %10 = arith.maximumf %8, %9 : vector<16x256xf32>
    %c0_7 = arith.constant 0 : index
    %c0_8 = arith.constant 0 : index
    %11 = vector.load %arg7[%c0_7, %c0_8] : memref<16x128xf32, #tpu.memory_space<vmem>>, vector<16x128xf32>
    %12 = arith.truncf %10 : vector<16x256xf32> to vector<16x256xbf16>
    %c0_9 = arith.constant 0 : index
    %c0_10 = arith.constant 0 : index
    %13 = vector.load %arg5[%c0_9, %c0_10] : memref<256x128xbf16, #tpu.memory_space<vmem>>, vector<256x128xbf16>
    %cst_11 = arith.constant dense<0.000000e+00> : vector<16x128xf32>
    %14 = tpu.matmul %12, %13, %cst_11 {dimension_numbers = #tpu.dot_dimension_numbers<[1], [0], [0], [1], [0, 0, 1, 1], [], []>} : vector<16x256xbf16>, vector<256x128xbf16>, vector<16x128xf32> -> vector<16x128xf32>
    %15 = arith.addf %11, %14 : vector<16x128xf32>
    %c0_12 = arith.constant 0 : index
    %c0_13 = arith.constant 0 : index
    %16 = vector.load %arg7[%c0_12, %c0_13] : memref<16x128xf32, #tpu.memory_space<vmem>>, vector<16x128xf32>
    tpu.vector_store %arg7[%c0_12, %c0_13], %15 {strides = array<i32>} : memref<16x128xf32, #tpu.memory_space<vmem>>, vector<16x128xf32>,
    %c0_i32_14 = arith.constant 0 : i32
    %17 = arith.cmpi eq, %arg1, %c0_i32_14 : i32
    %18 = arith.extui %17 : i1 to i32
    %c0_i32_15 = arith.constant 0 : i32
    %19 = arith.cmpi ne, %18, %c0_i32_15 : i32
    scf.if %19 {
      %c0_16 = arith.constant 0 : index
      %c0_17 = arith.constant 0 : index
      %20 = vector.load %arg7[%c0_16, %c0_17] : memref<16x128xf32, #tpu.memory_space<vmem>>, vector<16x128xf32>
      %c0_18 = arith.constant 0 : index
      %c0_19 = arith.constant 0 : index
      %21 = vector.load %arg6[%c0_18, %c0_19] : memref<1x128xf32, #tpu.memory_space<vmem>>, vector<1x128xf32>
      %22 = vector.broadcast %21 : vector<1x128xf32> to vector<16x128xf32>
      %23 = arith.addf %20, %22 : vector<16x128xf32>
      %c0_20 = arith.constant 0 : index
      %c0_21 = arith.constant 0 : index
      %24 = vector.load %arg7[%c0_20, %c0_21] : memref<16x128xf32, #tpu.memory_space<vmem>>, vector<16x128xf32>
      tpu.vector_store %arg7[%c0_20, %c0_21], %23 {strides = array<i32>} : memref<16x128xf32, #tpu.memory_space<vmem>>, vector<16x128xf32>,
    } else {
    }
    return
  }
  func.func @transform_0(%arg0: i32, %arg1: i32) -> (i32, i32) {
    %c0_i32 = arith.constant 0 : i32
    %c0_i32_0 = arith.constant 0 : i32
    return %arg0, %c0_i32 : i32, i32
  }
  func.func @transform_1(%arg0: i32, %arg1: i32) -> (i32, i32) {
    %c0_i32 = arith.constant 0 : i32
    %c0_i32_0 = arith.constant 0 : i32
    return %c0_i32, %arg1 : i32, i32
  }
  func.func @transform_2(%arg0: i32, %arg1: i32) -> (i32, i32) {
    %c0_i32 = arith.constant 0 : i32
    %c0_i32_0 = arith.constant 0 : i32
    return %c0_i32, %arg1 : i32, i32
  }
  func.func @transform_3(%arg0: i32, %arg1: i32) -> (i32, i32) {
    %c0_i32 = arith.constant 0 : i32
    %c0_i32_0 = arith.constant 0 : i32
    return %arg1, %c0_i32 : i32, i32
  }
  func.func @transform_4(%arg0: i32, %arg1: i32) -> (i32, i32) {
    %c0_i32 = arith.constant 0 : i32
    %c0_i32_0 = arith.constant 0 : i32
    %c0_i32_1 = arith.constant 0 : i32
    return %c0_i32, %c0_i32_0 : i32, i32
  }
  func.func @transform_5(%arg0: i32, %arg1: i32) -> (i32, i32) {
    %c0_i32 = arith.constant 0 : i32
    %c0_i32_0 = arith.constant 0 : i32
    return %arg0, %c0_i32 : i32, i32
  }
}

</mosaic_0001>

<bundles_post_ra>
// kernel: tpu_custom_call.1
= control target key start
LH: loop header
LB: loop body
LE: loop exit
PB: predicated region body
PF: predicated region fallthrough
CT: control target
= control target key end

     0   :  { %10 = vsyncpa [#allocation3], 0  ;;  %s743_s0 = inlined_call_operand.hbm [shape: bf16[16,128], index: 0, kind: input, shape index: {}]   ;;  %s744_s1 = inlined_call_operand.hbm [shape: bf16[128,256], index: 1, kind: input, shape index: {}]   ;;  %s745_s2 = inlined_call_operand.vmem [shape: f32[1,256], index: 2, kind: input, shape index: {}]   ;;  %s746_s3 = inlined_call_operand.hbm [shape: bf16[256,128], index: 3, kind: input, shape index: {}]   ;;  %s747_s4 = inlined_call_operand.vmem [shape: f32[1,128], index: 4, kind: input, shape index: {}]   ;;  %s748_s5 = inlined_call_operand.hbm [shape: f32[16,128], index: 5, kind: output, shape index: {}]  }
   0x1   :  { %11 = vsyncpa [#allocation6], 0 }
   0x2   :  { %12 = vsyncpa [#allocation4], 0  ;;  %s644_s18 = smov [#allocation5]   ;;  %s550_s22 = scalar_lea.hbm %s744_s1, 2048 }
   0x3   :  { %s30_s19 = sshll.u32 %s644_s18, 4  ;;  %p551_p0 = scmp.ne.s32.totalorder %s744_s1, %s550_s22  ;;  %s31_s19 = int_to_ptr.vmem [resolvable:$true] %s30_s19 }
   0x4   :  { %p554_p1 = scmp.lt.u32.totalorder %s550_s22, %s744_s1 }
   0x6   :  { %p556_p2 = pnand %p554_p1, %p551_p0 }
   0x8   :  { %559 = shalt.err (!%p556_p2)
}
   0x9   :  { %s560_s27 = scalar_lea.vmem %s31_s19, 2048  ;;  %p565_p4 = scmp.lt.s32.totalorder %s31_s19, %s31_s19 }
   0xa   :  { %p561_p3 = scmp.ne.s32.totalorder %s31_s19, %s560_s27  ;;  %p566_p5 = scmp.lt.s32.totalorder %s560_s27, %s560_s27 }
   0xc   :  { %p567_p6 = por %p566_p5, %p565_p4 }
   0xe   :  { %p568_p7 = pnand %p567_p6, %p561_p3 }
  0x10   :  { %571 = shalt.err (!%p568_p7)
}
  0x11   :  { %s645_s28 = smov 128   ;;  %s646_s29 = smov 8  }
  0x12   :  { %36 = dma.hbm_to_vmem [thread:$0]  %s744_s1, 2048, %s31_s19, [#allocation6], %s645_s28, %s645_s28, %s646_s29  }
  0x13   :  { %s647_s7 = smov [#allocation2]   ;;  %s572_s11 = scalar_lea.hbm %s743_s0, 128 }
  0x14   :  { %s18_s8 = sshll.u32 %s647_s7, 4  ;;  %p573_p8 = scmp.ne.s32.totalorder %s743_s0, %s572_s11  ;;  %s19_s8 = int_to_ptr.vmem [resolvable:$true] %s18_s8 }
  0x15   :  { %p576_p9 = scmp.lt.u32.totalorder %s572_s11, %s743_s0 }
  0x17   :  { %p578_p10 = pnand %p576_p9, %p573_p8 }
  0x19   :  { %581 = shalt.err (!%p578_p10)
}
  0x1a   :  { %s582_s16 = scalar_lea.vmem %s19_s8, 128  ;;  %p587_p12 = scmp.lt.s32.totalorder %s19_s8, %s19_s8 }
  0x1b   :  { %p583_p11 = scmp.ne.s32.totalorder %s19_s8, %s582_s16  ;;  %p588_p13 = scmp.lt.s32.totalorder %s582_s16, %s582_s16 }
  0x1d   :  { %p589_p0 = por %p588_p13, %p587_p12 }
  0x1f   :  { %p590_p1 = pnand %p589_p0, %p583_p11 }
  0x21   :  { %593 = shalt.err (!%p590_p1)
}
  0x22   :  { %s648_s1 = smov 64   ;;  %s649_s17 = smov 4  }
  0x23   :  { %24 = dma.hbm_to_vmem [thread:$0]  %s743_s0, 128, %s19_s8, [#allocation3], %s648_s1, %s648_s1, %s649_s17  }
  0x24   :  { %s650_s20 = smov [#allocation7]   ;;  %s594_s24 = scalar_lea.hbm %s746_s3, 2048 }
  0x25   :  { %s44_s21 = sshll.u32 %s650_s20, 4  ;;  %p595_p2 = scmp.ne.s32.totalorder %s746_s3, %s594_s24  ;;  %s45_s21 = int_to_ptr.vmem [resolvable:$true] %s44_s21 }
  0x26   :  { %p598_p3 = scmp.lt.u32.totalorder %s594_s24, %s746_s3 }
  0x28   :  { %p600_p4 = pnand %p598_p3, %p595_p2 }
  0x2a   :  { %603 = shalt.err (!%p600_p4)
}
  0x2b   :  { %s604_s6 = scalar_lea.vmem %s45_s21, 2048  ;;  %p609_p6 = scmp.lt.s32.totalorder %s45_s21, %s45_s21 }
  0x2c   :  { %p605_p5 = scmp.ne.s32.totalorder %s45_s21, %s604_s6  ;;  %p610_p7 = scmp.lt.s32.totalorder %s604_s6, %s604_s6 }
  0x2e   :  { %p611_p8 = por %p610_p7, %p609_p6 }
  0x30   :  { %p612_p9 = pnand %p611_p8, %p605_p5 }
  0x32   :  { %615 = shalt.err (!%p612_p9)
}
  0x33   :  { %50 = dma.hbm_to_vmem [thread:$0]  %s746_s3, 2048, %s45_s21, [#allocation6], %s648_s1, %s648_s1, %s649_s17  }
  0x34   :  { %638 = dma.done.wait [#allocation3], 128  }
  0x35   :  { %639 = vsyncadd [#allocation3], 4294967168 }
  0x36   :  { %640 = dma.done.wait [#allocation6], 4096  }
  0x37   :  { %641 = vsyncadd [#allocation6], 4294963200  ;;  %v651_v0 = vmov 0   ;;  %v509_v1 = vld [vmem:[#allocation5 + $0x4] ss:$8 sps:$4 sm:$0xff]   ;;  %v538_v16 = vld [vmem:[#allocation7 + $0x50] sm:$0xff]   ;;  %v89_v34 = vlaneseq }
  0x38   :  { %217 = vmatprep.mubr.bf16.mxu0 %v651_v0  ;;  %v511_v2 = vld [vmem:[#allocation5] ss:$8 sps:$4 sm:$0xff]   ;;  %185 = vmatprep.subr.bf16.mxu0 %v509_v1  ;;  %v512_v3 = vld [vmem:[#allocation5 + $0x14] ss:$8 sps:$4 sm:$0xff]   ;;  %v514_v4 = vld [vmem:[#allocation5 + $0x10] ss:$8 sps:$4 sm:$0xff]  }
  0x39   :  { %186 = vmatpush1.bf16.msra.mxu0 %v511_v2  ;;  %v515_v5 = vld [vmem:[#allocation5 + $0x24] ss:$8 sps:$4 sm:$0xff]   ;;  %v517_v6 = vld [vmem:[#allocation5 + $0x20] ss:$8 sps:$4 sm:$0xff]   ;;  %v518_v7 = vld [vmem:[#allocation5 + $0x34] ss:$8 sps:$4 sm:$0xff]  }
  0x3a   :  { %187 = vmatprep.subr.bf16.mxu0 %v512_v3  ;;  %v520_v8 = vld [vmem:[#allocation5 + $0x30] ss:$8 sps:$4 sm:$0xff]   ;;  %v521_v9 = vld [vmem:[#allocation5 + $0x44] ss:$8 sps:$4 sm:$0xff]   ;;  %v523_v11 = vld [vmem:[#allocation5 + $0x40] ss:$8 sps:$4 sm:$0xff]  }
  0x3b   :  { %v534_v10 = vld [vmem:[#allocation7 + $0x40] sm:$0xff]   ;;  %v524_v13 = vld [vmem:[#allocation5 + $0x54] ss:$8 sps:$4 sm:$0xff]   ;;  %v536_v14 = vld [vmem:[#allocation7 + $0x48] sm:$0xff]   ;;  %v90_v35 = vshrl.u32 %v89_v34, 7  ;;  %s652_s10 = smov [#allocation8]  }
  0x3c   :  { %v535_v12 = vld [vmem:[#allocation7] sm:$0xff]   ;;  %477 = vmatprep.subr.bf16.mxu1 %v534_v10  ;;  %v537_v15 = vld [vmem:[#allocation7 + $0x8] sm:$0xff]   ;;  %v526_v17 = vld [vmem:[#allocation5 + $0x50] ss:$8 sps:$4 sm:$0xff]   ;;  %s430_s11 = sshll.u32 %s652_s10, 4  ;;  %s431_s11 = int_to_ptr.vmem [resolvable:$true] %s430_s11 }
  0x3d   :  { %188 = vmatpush1.bf16.msra.mxu0 %v514_v4  ;;  %478 = vmatpush3.bf16.msra.mxu1 %v535_v12  ;;  %v527_v18 = vld [vmem:[#allocation5 + $0x64] ss:$8 sps:$4 sm:$0xff]   ;;  %v539_v19 = vld [vmem:[#allocation7 + $0x10] sm:$0xff]   ;;  %v540_v20 = vld [vmem:[#allocation7 + $0x58] sm:$0xff]   ;;  %v91_v36 = vsub.s32 0, %v90_v35  ;;  %v95_v38 = vsub.s32 1, %v90_v35  ;;  %p621_p11 = scmp.lt.s32.totalorder %s431_s11, %s431_s11 }
  0x3e   :  { %189 = vmatprep.subr.bf16.mxu0 %v515_v5  ;;  %479 = vmatprep.subr.bf16.mxu1 %v536_v14  ;;  %v529_v21 = vld [vmem:[#allocation5 + $0x60] ss:$8 sps:$4 sm:$0xff]   ;;  %v530_v22 = vld [vmem:[#allocation5 + $0x74] ss:$8 sps:$4 sm:$0xff]   ;;  %v532_v25 = vld [vmem:[#allocation5 + $0x70] ss:$8 sps:$4 sm:$0xff]  }
  0x3f   :  { %v541_v23 = vld [vmem:[#allocation7 + $0x18] sm:$0xff]   ;;  %v542_v24 = vld [vmem:[#allocation7 + $0x60] sm:$0xff]   ;;  %v544_v27 = vld [vmem:[#allocation7 + $0x68] sm:$0xff]   ;;  %s616_s12 = scalar_lea.vmem %s431_s11, 256 }
  0x40   :  { %v543_v26 = vld [vmem:[#allocation7 + $0x20] sm:$0xff]   ;;  %v533_v28 = vld [vmem:[#allocation2] sm:$0xff]   ;;  %v545_v29 = vld [vmem:[#allocation7 + $0x28] sm:$0xff]   ;;  %p617_p10 = scmp.ne.s32.totalorder %s431_s11, %s616_s12  ;;  %p622_p12 = scmp.lt.s32.totalorder %s616_s12, %s616_s12 }
  0x41   :  { %190 = vmatpush1.bf16.msra.mxu0 %v517_v6  ;;  %480 = vmatpush3.bf16.msra.mxu1 %v537_v15  ;;  %v546_v30 = vld [vmem:[#allocation7 + $0x70] sm:$0xff]   ;;  %v548_v32 = vld [vmem:[#allocation7 + $0x78] sm:$0xff]  }
  0x42   :  { %191 = vmatprep.subr.bf16.mxu0 %v518_v7  ;;  %481 = vmatprep.subr.bf16.mxu1 %v538_v16  ;;  %v547_v31 = vld [vmem:[#allocation7 + $0x30] sm:$0xff]   ;;  %v549_v33 = vld [vmem:[#allocation7 + $0x38] sm:$0xff]   ;;  %p623_p13 = por %p622_p12, %p621_p11 }
  0x43   :  { %v87_v37 = vld [vmem:[%s745_s2] sm:$0x3] }
  0x44   :  { %v92_v39 = vrot.slane %v87_v37, %v91_v36  ;;  %v96_v40 = vrot.slane %v87_v37, %v95_v38  ;;  %v476_v60 = vld [vmem:[%s747_s4] ss:$0 sm:$0xff]  ;;  %p624_p0 = pnand %p623_p13, %p617_p10 }
  0x45   :  { %192 = vmatpush1.bf16.msra.mxu0 %v520_v8  ;;  %482 = vmatpush3.bf16.msra.mxu1 %v539_v19 }
  0x46   :  { %193 = vmatprep.subr.bf16.mxu0 %v521_v9  ;;  %483 = vmatprep.subr.bf16.mxu1 %v540_v20 }
  0x49   :  { %194 = vmatpush1.bf16.msra.mxu0 %v523_v11  ;;  %484 = vmatpush3.bf16.msra.mxu1 %v541_v23 }
  0x4a   :  { %195 = vmatprep.subr.bf16.mxu0 %v524_v13  ;;  %485 = vmatprep.subr.bf16.mxu1 %v542_v24 }
  0x4d   :  { %196 = vmatpush1.bf16.msra.mxu0 %v526_v17  ;;  %486 = vmatpush3.bf16.msra.mxu1 %v543_v26 }
  0x4e   :  { %197 = vmatprep.subr.bf16.mxu0 %v527_v18  ;;  %487 = vmatprep.subr.bf16.mxu1 %v544_v27 }
  0x51   :  { %198 = vmatpush1.bf16.msra.mxu0 %v529_v21  ;;  %488 = vmatpush3.bf16.msra.mxu1 %v545_v29 }
  0x52   :  { %199 = vmatprep.subr.bf16.mxu0 %v530_v22  ;;  %489 = vmatprep.subr.bf16.mxu1 %v546_v30 }
  0x55   :  { %200 = vmatpush1.bf16.msra.mxu0 %v532_v25  ;;  %490 = vmatpush3.bf16.msra.mxu1 %v547_v31 }
  0x56   :  { %491 = vmatprep.subr.bf16.mxu1 %v548_v32 }
  0x58   :  { %218 = vmatmul.mubr.bf16.vlgmr.msra.gmra.mrb[0].mxu0 %v533_v28 }
  0x59   :  { %492 = vmatpush3.bf16.msra.mxu1 %v549_v33 }
 0x12b   :  { %v219_v41 = vpop.f32.mrb[0].mxu0 }
 0x12c   :  { %v220_v42 = vadd.f32 %v219_v41, %v92_v39  ;;  %v221_v43 = vpop.f32.mrb[1].mxu0 }
 0x12d   :  { %v222_v44 = vadd.f32 %v221_v43, %v96_v40  ;;  %v223_v45 = vpop.f32.mrb[2].mxu0 }
 0x12e   :  { %v224_v46 = vadd.f32 %v223_v45, %v92_v39  ;;  %v225_v47 = vpop.f32.mrb[3].mxu0  ;;  %v228_v49 = vmax.f32 %v220_v42, 0.0 }
 0x12f   :  { %v226_v48 = vadd.f32 %v225_v47, %v96_v40  ;;  %v229_v51 = vmax.f32 %v222_v44, 0.0 }
 0x130   :  { %v230_v50 = vmax.f32 %v224_v46, 0.0 }
 0x131   :  { %v231_v52 = vmax.f32 %v226_v48, 0.0 }
 0x132   :  { %v234_v53 = vpack.c.bf16 %v230_v50, %v228_v49 }
 0x133   :  { %v235_v54 = vpack.c.bf16 %v231_v52, %v229_v51 }
 0x135   :  { %396 = vmatprep.mubr.bf16.mxu1 %v235_v54 }
 0x136   :  { %397 = vmatmul.mubr.bf16.vlgmr.msra.gmra.mrb[0].mxu1 %v234_v53 }
 0x209   :  { %v493_v55 = vpop.f32.mrb[0].mxu1 }
 0x20a   :  { %v494_v56 = vpop.f32.mrb[1].mxu1 }
 0x20b   :  { %v495_v57 = vadd.f32 %v494_v56, %v493_v55  ;;  %v496_v58 = vpop.f32.mrb[2].mxu1 }
 0x20c   :  { %v497_v59 = vpop.f32.mrb[3].mxu1 }
 0x20d   :  { %v498_v61 = vadd.f32 %v497_v59, %v496_v58  ;;  %v421_v62 = vadd.f32 %v495_v57, %v476_v60 }
 0x20f   :  { %v422_v63 = vadd.f32 %v498_v61, %v476_v60  ;;  %423 = vst [vmem:[#allocation8] sm:$0xff] %v421_v62 }
 0x211   :  { %424 = vst [vmem:[#allocation8 + $0x8] sm:$0xff] %v422_v63 }
 0x212   :  { %627 = shalt.err (!%p624_p0)
}
 0x213   :  { %s628_s15 = scalar_lea.hbm %s748_s5, 256 }
 0x214   :  { %p629_p1 = scmp.ne.s32.totalorder %s748_s5, %s628_s15  ;;  %p632_p2 = scmp.lt.u32.totalorder %s628_s15, %s748_s5 }
 0x216   :  { %p634_p3 = pnand %p632_p2, %p629_p1 }
 0x218   :  { %637 = shalt.err (!%p634_p3)
}
 0x219   :  { %436 = dma.vmem_to_hbm [thread:$0]  %s431_s11, 256, %s748_s5, [#allocation4], %s645_s28, %s645_s28, %s646_s29  }
 0x21a   :  { %642 = dma.done.wait [#allocation4], 256  }
 0x21b   :  { %643 = vsyncadd [#allocation4], 4294967040 }
 0x21c   :  { %440 = vsyncpa [#allocation3], 1 }
 0x21d   :  { %441 = vsyncpa [#allocation6], 1 }
 0x21e   :  { %442 = vsyncpa [#allocation4], 1 }

// kernel: tpu_custom_call.1
= control target key start
LH: loop header
LB: loop body
LE: loop exit
PB: predicated region body
PF: predicated region fallthrough
CT: control target
= control target key end

     0   :  { %10 = vsyncpa [#allocation3], 0  ;;  %s743_s0 = inlined_call_operand.hbm [shape: bf16[16,128], index: 0, kind: input, shape index: {}]   ;;  %s744_s1 = inlined_call_operand.hbm [shape: bf16[128,256], index: 1, kind: input, shape index: {}]   ;;  %s745_s2 = inlined_call_operand.vmem [shape: f32[1,256], index: 2, kind: input, shape index: {}]   ;;  %s746_s3 = inlined_call_operand.hbm [shape: bf16[256,128], index: 3, kind: input, shape index: {}]   ;;  %s747_s4 = inlined_call_operand.vmem [shape: f32[1,128], index: 4, kind: input, shape index: {}]   ;;  %s748_s5 = inlined_call_operand.hbm [shape: f32[16,128], index: 5, kind: output, shape index: {}]  }
   0x1   :  { %11 = vsyncpa [#allocation6], 0 }
   0x2   :  { %12 = vsyncpa [#allocation4], 0  ;;  %s644_s18 = smov [#allocation5]   ;;  %s550_s22 = scalar_lea.hbm %s744_s1, 2048 }
   0x3   :  { %s30_s19 = sshll.u32 %s644_s18, 4  ;;  %p551_p0 = scmp.ne.s32.totalorder %s744_s1, %s550_s22  ;;  %s31_s19 = int_to_ptr.vmem [resolvable:$true] %s30_s19 }
   0x4   :  { %p554_p1 = scmp.lt.u32.totalorder %s550_s22, %s744_s1 }
   0x6   :  { %p556_p2 = pnand %p554_p1, %p551_p0 }
   0x8   :  { %559 = shalt.err (!%p556_p2)
}
   0x9   :  { %s560_s27 = scalar_lea.vmem %s31_s19, 2048  ;;  %p565_p4 = scmp.lt.s32.totalorder %s31_s19, %s31_s19 }
   0xa   :  { %p561_p3 = scmp.ne.s32.totalorder %s31_s19, %s560_s27  ;;  %p566_p5 = scmp.lt.s32.totalorder %s560_s27, %s560_s27 }
   0xc   :  { %p567_p6 = por %p566_p5, %p565_p4 }
   0xe   :  { %p568_p7 = pnand %p567_p6, %p561_p3 }
  0x10   :  { %571 = shalt.err (!%p568_p7)
}
  0x11   :  { %s645_s28 = smov 128   ;;  %s646_s29 = smov 8  }
  0x12   :  { %36 = dma.hbm_to_vmem [thread:$0]  %s744_s1, 2048, %s31_s19, [#allocation6], %s645_s28, %s645_s28, %s646_s29  }
  0x13   :  { %s647_s7 = smov [#allocation2]   ;;  %s572_s11 = scalar_lea.hbm %s743_s0, 128 }
  0x14   :  { %s18_s8 = sshll.u32 %s647_s7, 4  ;;  %p573_p8 = scmp.ne.s32.totalorder %s743_s0, %s572_s11  ;;  %s19_s8 = int_to_ptr.vmem [resolvable:$true] %s18_s8 }
  0x15   :  { %p576_p9 = scmp.lt.u32.totalorder %s572_s11, %s743_s0 }
  0x17   :  { %p578_p10 = pnand %p576_p9, %p573_p8 }
  0x19   :  { %581 = shalt.err (!%p578_p10)
}
  0x1a   :  { %s582_s16 = scalar_lea.vmem %s19_s8, 128  ;;  %p587_p12 = scmp.lt.s32.totalorder %s19_s8, %s19_s8 }
  0x1b   :  { %p583_p11 = scmp.ne.s32.totalorder %s19_s8, %s582_s16  ;;  %p588_p13 = scmp.lt.s32.totalorder %s582_s16, %s582_s16 }
  0x1d   :  { %p589_p0 = por %p588_p13, %p587_p12 }
  0x1f   :  { %p590_p1 = pnand %p589_p0, %p583_p11 }
  0x21   :  { %593 = shalt.err (!%p590_p1)
}
  0x22   :  { %s648_s1 = smov 64   ;;  %s649_s17 = smov 4  }
  0x23   :  { %24 = dma.hbm_to_vmem [thread:$0]  %s743_s0, 128, %s19_s8, [#allocation3], %s648_s1, %s648_s1, %s649_s17  }
  0x24   :  { %s650_s20 = smov [#allocation7]   ;;  %s594_s24 = scalar_lea.hbm %s746_s3, 2048 }
  0x25   :  { %s44_s21 = sshll.u32 %s650_s20, 4  ;;  %p595_p2 = scmp.ne.s32.totalorder %s746_s3, %s594_s24  ;;  %s45_s21 = int_to_ptr.vmem [resolvable:$true] %s44_s21 }
  0x26   :  { %p598_p3 = scmp.lt.u32.totalorder %s594_s24, %s746_s3 }
  0x28   :  { %p600_p4 = pnand %p598_p3, %p595_p2 }
  0x2a   :  { %603 = shalt.err (!%p600_p4)
}
  0x2b   :  { %s604_s6 = scalar_lea.vmem %s45_s21, 2048  ;;  %p609_p6 = scmp.lt.s32.totalorder %s45_s21, %s45_s21 }
  0x2c   :  { %p605_p5 = scmp.ne.s32.totalorder %s45_s21, %s604_s6  ;;  %p610_p7 = scmp.lt.s32.totalorder %s604_s6, %s604_s6 }
  0x2e   :  { %p611_p8 = por %p610_p7, %p609_p6 }
  0x30   :  { %p612_p9 = pnand %p611_p8, %p605_p5 }
  0x32   :  { %615 = shalt.err (!%p612_p9)
}
  0x33   :  { %50 = dma.hbm_to_vmem [thread:$0]  %s746_s3, 2048, %s45_s21, [#allocation6], %s648_s1, %s648_s1, %s649_s17  }
  0x34   :  { %638 = dma.done.wait [#allocation3], 128  }
  0x35   :  { %639 = vsyncadd [#allocation3], 4294967168 }
  0x36   :  { %640 = dma.done.wait [#allocation6], 4096  }
  0x37   :  { %641 = vsyncadd [#allocation6], 4294963200  ;;  %v651_v0 = vmov 0   ;;  %v509_v1 = vld [vmem:[#allocation5 + $0x4] ss:$8 sps:$4 sm:$0xff]   ;;  %v538_v16 = vld [vmem:[#allocation7 + $0x50] sm:$0xff]   ;;  %v89_v34 = vlaneseq }
  0x38   :  { %217 = vmatprep.mubr.bf16.mxu0 %v651_v0  ;;  %v511_v2 = vld [vmem:[#allocation5] ss:$8 sps:$4 sm:$0xff]   ;;  %185 = vmatprep.subr.bf16.mxu0 %v509_v1  ;;  %v512_v3 = vld [vmem:[#allocation5 + $0x14] ss:$8 sps:$4 sm:$0xff]   ;;  %v514_v4 = vld [vmem:[#allocation5 + $0x10] ss:$8 sps:$4 sm:$0xff]  }
  0x39   :  { %186 = vmatpush1.bf16.msra.mxu0 %v511_v2  ;;  %v515_v5 = vld [vmem:[#allocation5 + $0x24] ss:$8 sps:$4 sm:$0xff]   ;;  %v517_v6 = vld [vmem:[#allocation5 + $0x20] ss:$8 sps:$4 sm:$0xff]   ;;  %v518_v7 = vld [vmem:[#allocation5 + $0x34] ss:$8 sps:$4 sm:$0xff]  }
  0x3a   :  { %187 = vmatprep.subr.bf16.mxu0 %v512_v3  ;;  %v520_v8 = vld [vmem:[#allocation5 + $0x30] ss:$8 sps:$4 sm:$0xff]   ;;  %v521_v9 = vld [vmem:[#allocation5 + $0x44] ss:$8 sps:$4 sm:$0xff]   ;;  %v523_v11 = vld [vmem:[#allocation5 + $0x40] ss:$8 sps:$4 sm:$0xff]  }
  0x3b   :  { %v534_v10 = vld [vmem:[#allocation7 + $0x40] sm:$0xff]   ;;  %v524_v13 = vld [vmem:[#allocation5 + $0x54] ss:$8 sps:$4 sm:$0xff]   ;;  %v536_v14 = vld [vmem:[#allocation7 + $0x48] sm:$0xff]   ;;  %v90_v35 = vshrl.u32 %v89_v34, 7  ;;  %s652_s10 = smov [#allocation8]  }
  0x3c   :  { %v535_v12 = vld [vmem:[#allocation7] sm:$0xff]   ;;  %477 = vmatprep.subr.bf16.mxu1 %v534_v10  ;;  %v537_v15 = vld [vmem:[#allocation7 + $0x8] sm:$0xff]   ;;  %v526_v17 = vld [vmem:[#allocation5 + $0x50] ss:$8 sps:$4 sm:$0xff]   ;;  %s430_s11 = sshll.u32 %s652_s10, 4  ;;  %s431_s11 = int_to_ptr.vmem [resolvable:$true] %s430_s11 }
  0x3d   :  { %188 = vmatpush1.bf16.msra.mxu0 %v514_v4  ;;  %478 = vmatpush3.bf16.msra.mxu1 %v535_v12  ;;  %v527_v18 = vld [vmem:[#allocation5 + $0x64] ss:$8 sps:$4 sm:$0xff]   ;;  %v539_v19 = vld [vmem:[#allocation7 + $0x10] sm:$0xff]   ;;  %v540_v20 = vld [vmem:[#allocation7 + $0x58] sm:$0xff]   ;;  %v91_v36 = vsub.s32 0, %v90_v35  ;;  %v95_v38 = vsub.s32 1, %v90_v35  ;;  %p621_p11 = scmp.lt.s32.totalorder %s431_s11, %s431_s11 }
  0x3e   :  { %189 = vmatprep.subr.bf16.mxu0 %v515_v5  ;;  %479 = vmatprep.subr.bf16.mxu1 %v536_v14  ;;  %v529_v21 = vld [vmem:[#allocation5 + $0x60] ss:$8 sps:$4 sm:$0xff]   ;;  %v530_v22 = vld [vmem:[#allocation5 + $0x74] ss:$8 sps:$4 sm:$0xff]   ;;  %v532_v25 = vld [vmem:[#allocation5 + $0x70] ss:$8 sps:$4 sm:$0xff]  }
  0x3f   :  { %v541_v23 = vld [vmem:[#allocation7 + $0x18] sm:$0xff]   ;;  %v542_v24 = vld [vmem:[#allocation7 + $0x60] sm:$0xff]   ;;  %v544_v27 = vld [vmem:[#allocation7 + $0x68] sm:$0xff]   ;;  %s616_s12 = scalar_lea.vmem %s431_s11, 256 }
  0x40   :  { %v543_v26 = vld [vmem:[#allocation7 + $0x20] sm:$0xff]   ;;  %v533_v28 = vld [vmem:[#allocation2] sm:$0xff]   ;;  %v545_v29 = vld [vmem:[#allocation7 + $0x28] sm:$0xff]   ;;  %p617_p10 = scmp.ne.s32.totalorder %s431_s11, %s616_s12  ;;  %p622_p12 = scmp.lt.s32.totalorder %s616_s12, %s616_s12 }
  0x41   :  { %190 = vmatpush1.bf16.msra.mxu0 %v517_v6  ;;  %480 = vmatpush3.bf16.msra.mxu1 %v537_v15  ;;  %v546_v30 = vld [vmem:[#allocation7 + $0x70] sm:$0xff]   ;;  %v548_v32 = vld [vmem:[#allocation7 + $0x78] sm:$0xff]  }
  0x42   :  { %191 = vmatprep.subr.bf16.mxu0 %v518_v7  ;;  %481 = vmatprep.subr.bf16.mxu1 %v538_v16  ;;  %v547_v31 = vld [vmem:[#allocation7 + $0x30] sm:$0xff]   ;;  %v549_v33 = vld [vmem:[#allocation7 + $0x38] sm:$0xff]   ;;  %p623_p13 = por %p622_p12, %p621_p11 }
  0x43   :  { %v87_v37 = vld [vmem:[%s745_s2] sm:$0x3] }
  0x44   :  { %v92_v39 = vrot.slane %v87_v37, %v91_v36  ;;  %v96_v40 = vrot.slane %v87_v37, %v95_v38  ;;  %v476_v60 = vld [vmem:[%s747_s4] ss:$0 sm:$0xff]  ;;  %p624_p0 = pnand %p623_p13, %p617_p10 }
  0x45   :  { %192 = vmatpush1.bf16.msra.mxu0 %v520_v8  ;;  %482 = vmatpush3.bf16.msra.mxu1 %v539_v19 }
  0x46   :  { %193 = vmatprep.subr.bf16.mxu0 %v521_v9  ;;  %483 = vmatprep.subr.bf16.mxu1 %v540_v20 }
  0x49   :  { %194 = vmatpush1.bf16.msra.mxu0 %v523_v11  ;;  %484 = vmatpush3.bf16.msra.mxu1 %v541_v23 }
  0x4a   :  { %195 = vmatprep.subr.bf16.mxu0 %v524_v13  ;;  %485 = vmatprep.subr.bf16.mxu1 %v542_v24 }
  0x4d   :  { %196 = vmatpush1.bf16.msra.mxu0 %v526_v17  ;;  %486 = vmatpush3.bf16.msra.mxu1 %v543_v26 }
  0x4e   :  { %197 = vmatprep.subr.bf16.mxu0 %v527_v18  ;;  %487 = vmatprep.subr.bf16.mxu1 %v544_v27 }
  0x51   :  { %198 = vmatpush1.bf16.msra.mxu0 %v529_v21  ;;  %488 = vmatpush3.bf16.msra.mxu1 %v545_v29 }
  0x52   :  { %199 = vmatprep.subr.bf16.mxu0 %v530_v22  ;;  %489 = vmatprep.subr.bf16.mxu1 %v546_v30 }
  0x55   :  { %200 = vmatpush1.bf16.msra.mxu0 %v532_v25  ;;  %490 = vmatpush3.bf16.msra.mxu1 %v547_v31 }
  0x56   :  { %491 = vmatprep.subr.bf16.mxu1 %v548_v32 }
  0x58   :  { %218 = vmatmul.mubr.bf16.vlgmr.msra.gmra.mrb[0].mxu0 %v533_v28 }
  0x59   :  { %492 = vmatpush3.bf16.msra.mxu1 %v549_v33 }
 0x12b   :  { %v219_v41 = vpop.f32.mrb[0].mxu0 }
 0x12c   :  { %v220_v42 = vadd.f32 %v219_v41, %v92_v39  ;;  %v221_v43 = vpop.f32.mrb[1].mxu0 }
 0x12d   :  { %v222_v44 = vadd.f32 %v221_v43, %v96_v40  ;;  %v223_v45 = vpop.f32.mrb[2].mxu0 }
 0x12e   :  { %v224_v46 = vadd.f32 %v223_v45, %v92_v39  ;;  %v225_v47 = vpop.f32.mrb[3].mxu0  ;;  %v228_v49 = vmax.f32 %v220_v42, 0.0 }
 0x12f   :  { %v226_v48 = vadd.f32 %v225_v47, %v96_v40  ;;  %v229_v51 = vmax.f32 %v222_v44, 0.0 }
 0x130   :  { %v230_v50 = vmax.f32 %v224_v46, 0.0 }
 0x131   :  { %v231_v52 = vmax.f32 %v226_v48, 0.0 }
 0x132   :  { %v234_v53 = vpack.c.bf16 %v230_v50, %v228_v49 }
 0x133   :  { %v235_v54 = vpack.c.bf16 %v231_v52, %v229_v51 }
 0x135   :  { %396 = vmatprep.mubr.bf16.mxu1 %v235_v54 }
 0x136   :  { %397 = vmatmul.mubr.bf16.vlgmr.msra.gmra.mrb[0].mxu1 %v234_v53 }
 0x209   :  { %v493_v55 = vpop.f32.mrb[0].mxu1 }
 0x20a   :  { %v494_v56 = vpop.f32.mrb[1].mxu1 }
 0x20b   :  { %v495_v57 = vadd.f32 %v494_v56, %v493_v55  ;;  %v496_v58 = vpop.f32.mrb[2].mxu1 }
 0x20c   :  { %v497_v59 = vpop.f32.mrb[3].mxu1 }
 0x20d   :  { %v498_v61 = vadd.f32 %v497_v59, %v496_v58  ;;  %v421_v62 = vadd.f32 %v495_v57, %v476_v60 }
 0x20f   :  { %v422_v63 = vadd.f32 %v498_v61, %v476_v60  ;;  %423 = vst [vmem:[#allocation8] sm:$0xff] %v421_v62 }
 0x211   :  { %424 = vst [vmem:[#allocation8 + $0x8] sm:$0xff] %v422_v63 }
 0x212   :  { %627 = shalt.err (!%p624_p0)
}
 0x213   :  { %s628_s15 = scalar_lea.hbm %s748_s5, 256 }
 0x214   :  { %p629_p1 = scmp.ne.s32.totalorder %s748_s5, %s628_s15  ;;  %p632_p2 = scmp.lt.u32.totalorder %s628_s15, %s748_s5 }
 0x216   :  { %p634_p3 = pnand %p632_p2, %p629_p1 }
 0x218   :  { %637 = shalt.err (!%p634_p3)
}
 0x219   :  { %436 = dma.vmem_to_hbm [thread:$0]  %s431_s11, 256, %s748_s5, [#allocation4], %s645_s28, %s645_s28, %s646_s29  }
 0x21a   :  { %642 = dma.done.wait [#allocation4], 256  }
 0x21b   :  { %643 = vsyncadd [#allocation4], 4294967040 }
 0x21c   :  { %440 = vsyncpa [#allocation3], 1 }
 0x21d   :  { %441 = vsyncpa [#allocation6], 1 }
 0x21e   :  { %442 = vsyncpa [#allocation4], 1 }

</bundles_post_ra>
